<compile_context>
chip_gen: v6e
topology: v6e:2x2x1
jax: 0.10.0
libtpu: 0.0.40
codegen_flags: <defaults>
</compile_context>

<pallas_src>
import functools

import jax
import jax.numpy as jnp
from jax.experimental import pallas as pl
from jax.experimental.pallas import tpu as pltpu


def _swish_kernel(x_ref, o_ref):
    xf = x_ref[...].astype(jnp.float32)
    # sigmoid via a single transcendental (tanh) -> one EUP push per vreg
    # instead of exp + reciprocal; keeps v7x HBM-bound.  f32 internal compute.
    sig = 0.5 * (jnp.tanh(0.5 * xf) + 1.0)
    o_ref[...] = (xf * sig).astype(o_ref.dtype)


@functools.lru_cache(maxsize=None)
def _vmem_capacity_bytes() -> int:
    try:
        return int(pltpu.get_tpu_info().vmem_capacity_bytes)
    except Exception:
        # Conservative default (v7x has 64 MiB per TensorCore).
        return 64 * 1024 * 1024


def _align_up(v: int, m: int) -> int:
    return pl.cdiv(v, m) * m


def swish(x: jax.Array, *, min_pallas_bytes: int = 64 * 1024) -> jax.Array:
    """Elementwise swish: x * sigmoid(x). Matches the torch module's forward."""
    orig_shape = x.shape
    orig_dtype = x.dtype
    n = x.size
    if n == 0:
        return x

    itemsize = jnp.dtype(orig_dtype).itemsize

    # Widest lane-dense slab width that divides n exactly (no pad, no slice).
    W = None
    for cand in (1024, 512, 256, 128):
        if n % cand == 0:
            W = cand
            break

    # Small or ragged inputs: fused XLA elementwise is already at roofline;
    # pallas_call launch + tail handling would only add overhead / HBM passes.
    if W is None or n * itemsize < min_pallas_bytes:
        return x * jax.nn.sigmoid(x)

    rows = n // W  # exact, no padding

    # Generation-aware block / scoped-VMEM sizing.
    vmem_cap = _vmem_capacity_bytes()
    if vmem_cap >= 100 * 1024 * 1024:          # v5e / v6e (128 MiB physical)
        target_block_bytes = 8 * 1024 * 1024
        vmem_limit = 64 * 1024 * 1024
    else:                                      # v7x (64 MiB) or unknown
        target_block_bytes = 4 * 1024 * 1024
        vmem_limit = 32 * 1024 * 1024

    # Sublane alignment for packed dtypes: 8 (f32), 16 (bf16/f16), 32 (int8/fp8).
    sub = max(8, 32 // itemsize)

    # Block rows: ~target_block_bytes per block, aligned to sublane packing.
    tr = max(sub, (target_block_bytes // (W * itemsize) // sub) * sub)

    # Prefer >= 4 grid steps when there is enough data so v7x's two TensorCores
    # ("parallel" semantics) each get >= 2 pipelined steps; ceil-round the tile.
    if rows >= 4 * sub and tr * 4 > rows:
        tr = max(sub, _align_up(pl.cdiv(rows, 4), sub))
    elif rows >= 2 * sub and tr * 2 > rows:
        tr = max(sub, _align_up(pl.cdiv(rows, 2), sub))
    tr = min(tr, _align_up(rows, sub))

    grid = (pl.cdiv(rows, tr),)  # partial last block is masked by Pallas

    x2d = x.reshape(rows, W)     # contiguous reshape: bitcast, no HBM pass

    out2d = pl.pallas_call(
        _swish_kernel,
        out_shape=jax.ShapeDtypeStruct((rows, W), orig_dtype),
        grid_spec=pltpu.PrefetchScalarGridSpec(
            num_scalar_prefetch=0,
            grid=grid,
            in_specs=[pl.BlockSpec((tr, W), lambda i: (i, 0))],
            out_specs=pl.BlockSpec((tr, W), lambda i: (i, 0)),
        ),
        compiler_params=pltpu.CompilerParams(
            dimension_semantics=("parallel",),
            vmem_limit_bytes=vmem_limit,
        ),
    )(x2d)

    return out2d.reshape(orig_shape)


if __name__ == "__main__":
    key = jax.random.PRNGKey(0)
    k1, k2, k3 = jax.random.split(key, 3)

    # 1) Aligned, large-enough activation -> exercises the Pallas kernel path
    #    (W=1024 lane-dense slab, 4 grid steps).
    x1 = jax.random.normal(k1, (2, 4, 64, 128), dtype=jnp.float32)
    y1 = jax.block_until_ready(swish(x1))
    ref1 = x1 * jax.nn.sigmoid(x1)
    assert y1.shape == x1.shape and y1.dtype == x1.dtype
    assert jnp.allclose(y1, ref1, atol=1e-5, rtol=1e-5)

    # 2) Small activation typical of the dynamics module -> fused XLA fast path.
    x2 = jax.random.normal(k2, (2, 4, 16, 16), dtype=jnp.float32)
    y2 = jax.block_until_ready(swish(x2))
    ref2 = x2 * jax.nn.sigmoid(x2)
    assert y2.shape == x2.shape and y2.dtype == x2.dtype
    assert jnp.allclose(y2, ref2, atol=1e-6, rtol=1e-6)

    # 3) Ragged shape -> fused XLA fallback (no pad/slice HBM passes).
    x3 = jax.random.normal(k3, (3, 5, 7), dtype=jnp.float32)
    y3 = jax.block_until_ready(swish(x3))
    ref3 = x3 * jax.nn.sigmoid(x3)
    assert y3.shape == x3.shape and y3.dtype == x3.dtype
    assert jnp.allclose(y3, ref3, atol=1e-6, rtol=1e-6)

    print("KERNEL_OK")
</pallas_src>

<mosaic_0001>
module attributes {stable_mosaic.version = 11 : i64} {
  func.func @_swish_kernel(%arg0: i32, %arg1: memref<16x1024xf32, #tpu.memory_space<vmem>>, %arg2: memref<16x1024xf32, #tpu.memory_space<vmem>>) attributes {dimension_semantics = [#tpu.dimension_semantics<parallel>], iteration_bounds = array<i64: 4>, scalar_prefetch = 0 : i64, scratch_operands = 0 : i64, tpu.core_type = #tpu.core_type<tc>, window_params = [{transform_indices = @transform_0, window_bounds = array<i64: 16, 1024>}, {transform_indices = @transform_1, window_bounds = array<i64: 16, 1024>}]} {
    %c0 = arith.constant 0 : index
    %c0_0 = arith.constant 0 : index
    %0 = vector.load %arg1[%c0, %c0_0] : memref<16x1024xf32, #tpu.memory_space<vmem>>, vector<16x1024xf32>
    %cst = arith.constant 5.000000e-01 : f32
    %1 = vector.broadcast %cst : f32 to vector<16x1024xf32>
    %2 = arith.mulf %1, %0 : vector<16x1024xf32>
    %3 = math.tanh %2 : vector<16x1024xf32>
    %cst_1 = arith.constant 1.000000e+00 : f32
    %4 = vector.broadcast %cst_1 : f32 to vector<16x1024xf32>
    %5 = arith.addf %3, %4 : vector<16x1024xf32>
    %cst_2 = arith.constant 5.000000e-01 : f32
    %6 = vector.broadcast %cst_2 : f32 to vector<16x1024xf32>
    %7 = arith.mulf %6, %5 : vector<16x1024xf32>
    %8 = arith.mulf %0, %7 : vector<16x1024xf32>
    %c0_3 = arith.constant 0 : index
    %c0_4 = arith.constant 0 : index
    %9 = vector.load %arg2[%c0_3, %c0_4] : memref<16x1024xf32, #tpu.memory_space<vmem>>, vector<16x1024xf32>
    tpu.vector_store %arg2[%c0_3, %c0_4], %8 {strides = array<i32>} : memref<16x1024xf32, #tpu.memory_space<vmem>>, vector<16x1024xf32>,
    return
  }
  func.func @transform_0(%arg0: i32) -> (i32, i32) {
    %c0_i32 = arith.constant 0 : i32
    %c0_i32_0 = arith.constant 0 : i32
    return %arg0, %c0_i32 : i32, i32
  }
  func.func @transform_1(%arg0: i32) -> (i32, i32) {
    %c0_i32 = arith.constant 0 : i32
    %c0_i32_0 = arith.constant 0 : i32
    return %arg0, %c0_i32 : i32, i32
  }
}

</mosaic_0001>

<bundles_post_ra>
// kernel: tpu_custom_call.1
= control target key start
LH: loop header
LB: loop body
LE: loop exit
PB: predicated region body
PF: predicated region fallthrough
CT: control target
= control target key end

     0   :  { %6 = vsyncpa [#allocation3], 0  ;;  %s803_s0 = inlined_call_operand.hbm [shape: f32[64,1024], index: 0, kind: input, shape index: {}]   ;;  %s804_s1 = inlined_call_operand.hbm [shape: f32[64,1024], index: 1, kind: output, shape index: {}]  }
   0x1   :  { %8 = vsyncpa [#allocation3 + $0x1], 0 }
   0x2   :  { %9 = vsyncpa [#allocation4], 0 }
   0x3   :  { %11 = vsyncpa [#allocation4 + $0x1], 0  ;;  %s550_s6 = smov 0   ;;  %s552_s7 = smov 0  }
   0x4   :  { %s554_s8 = smov 0   ;;  %s556_s9 = smov 0  }
   0x5 LB: > { %s571_s10 = sadd.s32 4294967295, %s532_s9   ;;  %s338_s11 = sadd.s32 4294967294, %s532_s9   ;;  %s532_s9 = sphi %s556_s9, %s818_s9   ;;  %s528_s8 = sphi %s554_s8, %s817_s8   ;;  %s524_s7 = sphi %s552_s7, %s816_s7   ;;  %s520_s6 = sphi %s550_s6, %s815_s6  }
   0x6   : > { %s575_s12 = sadd.s32 1, %s532_s9   ;;  %s24_s13 = sadd.s32 1, %s528_s8 }
   0x7   : > { %s21_s14 = ssub.s32 %s532_s9, %s575_s12  ;;  %p31_p0 = scmp.ne.s32.totalorder %s528_s8, %s524_s7 }
   0x8   : > { %p22_p1 = scmp.eq.s32.totalorder %s21_s14, 0  ;;  %p32_p2 = scmp.eq.s32.totalorder %s532_s9, 0 }
   0x9   : > { %p37_p3 = scmp.ne.s32.totalorder %s524_s7, %s520_s6  ;;  %p38_p4 = scmp.eq.s32.totalorder %s571_s10, 0 }
   0xa   : > { %s587_s15 = scalar_select %p22_p1, %s528_s8, %s24_s13  }
   0xb   : > { %p589_p5 = por %p32_p2, %p31_p0  ;;  %p593_p6 = por %p38_p4, %p37_p3 }
   0xc   : > { %p61_p7 = scmp.eq.s32.totalorder %s571_s10, 3  ;;  %p67_p8 = scmp.eq.s32.totalorder %s338_s11, 3 }
   0xd   : > { %s808_s17 = scalar_select %p593_p6, 1, 0 }
   0xe   : > { %p370_p9 = scmp.lt.s32.totalorder %s532_s9, 4  ;;  %p599_p10 = por %p61_p7, %p31_p0 }
   0xf   : > { %p603_p11 = por %p67_p8, %p37_p3  ;;  %s87_s20 = sand.u32 1, %s528_s8  }
  0x10   : > { %s809_s18 = scalar_select %p599_p10, 1, 0 }
  0x11   : > { %s810_s19 = scalar_select %p603_p11, 1, 0 }
  0x12   : > { %s355_s21 = sshll.u32 %s532_s9, 11  ;;  %s341_s22 = sshll.u32 %s87_s20, 7 }
  0x13   : > { %s612_s25 = scalar_lea.hbm %s803_s0, %s355_s21  ;;  %s91_s26 = scalar_lea.vmem [#allocation2], %s341_s22 }
  0x14   : > { %s99_s27 = sshll.u32 %s91_s26, 4  ;;  %p616_p12 = pnand %p370_p9, %p589_p5  ;;  %s620_s27 = int_to_ptr.vmem [resolvable:$true] %s99_s27 }
  0x15   : > { %s622_s29 = scalar_lea.sflag [#allocation3], %s87_s20  ;;  %s440_s30 = scalar_lea.hbm %s612_s25, 2048 }
  0x16   : > { %p441_p13 = scmp.ne.s32.totalorder %s612_s25, %s440_s30  ;;  %p442_p0 = pneg %p616_p12 }
  0x17   : > { %s445_s4 = scalar_lea.hbm %s803_s0, 8192  ;;  %p446_p3 = scmp.lt.s32.totalorder %s612_s25, %s803_s0 }
  0x18   : > { %p443_p1 = pnand %p442_p0, %p441_p13  ;;  %p447_p4 = scmp.lt.s32.totalorder %s445_s4, %s440_s30 }
  0x1a   : > { %p444_p2 = pneg %p443_p1  ;;  %p448_p5 = por %p447_p4, %p446_p3 }
  0x1c   : > { %p449_p7 = pnand %p448_p5, %p444_p2 }
  0x1e   : > { %452 = shalt.err (!%p449_p7)
}
  0x1f   : > { %s453_s13 = scalar_lea.vmem %s620_s27, 2048  ;;  %s534_s14 = smov [#allocation2]  }
  0x20   : > { %p454_p8 = scmp.ne.s32.totalorder %s620_s27, %s453_s13  ;;  %s458_s16 = sshll.u32 %s534_s14, 4  ;;  %s459_s16 = int_to_ptr.vmem [resolvable:$false] %s458_s16 }
  0x21   : > { %s460_s20 = scalar_lea.vmem %s459_s16, 4096  ;;  %p461_p1 = scmp.lt.s32.totalorder %s620_s27, %s459_s16 }
  0x22   : > { %p456_p9 = pnand %p454_p8, %p442_p0  ;;  %p462_p11 = scmp.lt.s32.totalorder %s460_s20, %s453_s13 }
  0x24   : > { %p457_p13 = pneg %p456_p9  ;;  %p463_p10 = por %p462_p11, %p461_p1 }
  0x26   : > { %p464_p6 = pnand %p463_p10, %p457_p13 }
  0x28   : > { %467 = shalt.err (!%p464_p6)
}
  0x29   : > { %s535_s21 = smov 1024   ;;  %s536_s22 = smov 64  }
  0x2a   : > { %365 = dma.hbm_to_vmem [thread:$0]  (!%p616_p12), %s612_s25, 2048, %s620_s27, %s622_s29, %s535_s21, %s535_s21, %s536_s22  }
  0x2b   : > { %p345_p0 = scmp.ge.s32.totalorder %s532_s9, 1  ;;  %p107_p2 = scmp.lt.s32.totalorder %s532_s9, 5 }
  0x2d   : > { %p108_p3 = pnand %p345_p0, %p107_p2 }
  0x2e   : > { %s646_s23 = sand.u32 (!%p108_p3), 1, %s524_s7   ;;  %p812_p6 = scmp.ne.s32.totalorder (!%p108_p3), %s808_s17, 0 }
  0x2f   : > { %111 = sbr.rel (%p108_p3) target bundleno = 105 (0x69), region = 24  ;;  %s346_s24 = sshll.u32 (!%p108_p3), %s646_s23, 7 }
  0x30   : > { %s114_s26 = scalar_lea.sflag (!%p108_p3), [#allocation3], %s646_s23  ;;  %s652_s30 = scalar_lea.vmem (!%p108_p3), [#allocation2], %s346_s24 }
  0x34   : > { %511 = dma.done.wait (%p812_p6), %s114_s26, 2048  }
  0x35   : > { %513 = vsyncadd (%p812_p6), %s114_s26, 4294965248  ;;  %v138_v0 = vld [vmem:[%s652_s30] sm:$0xff]  ;;  %v660_v1 = vld [vmem:[%s652_s30 + $0x8] sm:$0xff]  ;;  %s722_s17 = scalar_lea.vmem [#allocation5], %s346_s24  ;;  %s357_s25 = sshll.u32 %s571_s10, 11 }
  0x36   : > { %v663_v2 = vld [vmem:[%s652_s30 + $0x10] sm:$0xff]  ;;  %v154_v3 = vmul.f32 0.5, %v138_v0  ;;  %v155_v4 = vmul.f32 0.5, %v660_v1  ;;  %v668_v6 = vld [vmem:[%s652_s30 + $0x18] sm:$0xff]  ;;  %v671_v7 = vld [vmem:[%s652_s30 + $0x20] sm:$0xff]  ;;  %s265_s27 = sshll.u32 %s722_s17, 4  ;;  %s755_s2 = scalar_lea.hbm %s804_s1, %s357_s25  ;;  %s757_s27 = int_to_ptr.vmem [resolvable:$true] %s265_s27 }
  0x37   : > { %v156_v5 = vmul.f32 0.5, %v663_v2  ;;  %v674_v8 = vld [vmem:[%s652_s30 + $0x28] sm:$0xff]  ;;  %v157_v9 = vmul.f32 0.5, %v668_v6  ;;  %v678_v10 = vld [vmem:[%s652_s30 + $0x30] sm:$0xff]  ;;  %v158_v11 = vmul.f32 0.5, %v671_v7  ;;  %v682_v12 = vld [vmem:[%s652_s30 + $0x38] sm:$0xff] }
  0x38   : > { %408 = vtanh.f32 %v154_v3  ;;  %v159_v13 = vmul.f32 0.5, %v674_v8  ;;  %v686_v14 = vld [vmem:[%s652_s30 + $0x40] sm:$0xff]  ;;  %v160_v15 = vmul.f32 0.5, %v678_v10  ;;  %v690_v16 = vld [vmem:[%s652_s30 + $0x48] sm:$0xff]  ;;  %v161_v17 = vmul.f32 0.5, %v682_v12  ;;  %v694_v18 = vld [vmem:[%s652_s30 + $0x50] sm:$0xff] }
  0x39   : > { %410 = vtanh.f32 %v155_v4  ;;  %v162_v19 = vmul.f32 0.5, %v686_v14  ;;  %v698_v20 = vld [vmem:[%s652_s30 + $0x58] sm:$0xff]  ;;  %v163_v21 = vmul.f32 0.5, %v690_v16  ;;  %v702_v22 = vld [vmem:[%s652_s30 + $0x60] sm:$0xff]  ;;  %v164_v23 = vmul.f32 0.5, %v694_v18  ;;  %v706_v24 = vld [vmem:[%s652_s30 + $0x68] sm:$0xff] }
  0x3a   : > { %412 = vtanh.f32 %v156_v5  ;;  %v165_v25 = vmul.f32 0.5, %v698_v20  ;;  %v710_v26 = vld [vmem:[%s652_s30 + $0x70] sm:$0xff]  ;;  %v166_v27 = vmul.f32 0.5, %v702_v22  ;;  %v714_v28 = vld [vmem:[%s652_s30 + $0x78] sm:$0xff]  ;;  %v167_v29 = vmul.f32 0.5, %v706_v24  ;;  %s251_s10 = scalar_lea.sflag [#allocation4], %s646_s23 }
  0x3b   : > { %414 = vtanh.f32 %v157_v9  ;;  %v168_v30 = vmul.f32 0.5, %v710_v26  ;;  %v169_v31 = vmul.f32 0.5, %v714_v28  ;;  %s468_s3 = scalar_lea.vmem %s757_s27, 2048  ;;  %p813_p11 = scmp.ne.s32.totalorder %s809_s18, 0 }
  0x3c   : > { %416 = vtanh.f32 %v158_v11  ;;  %p469_p10 = scmp.ne.s32.totalorder %s757_s27, %s468_s3  ;;  %s537_s4 = smov [#allocation5]  }
  0x3d   : > { %418 = vtanh.f32 %v159_v13  ;;  %s472_s5 = sshll.u32 %s537_s4, 4  ;;  %s473_s5 = int_to_ptr.vmem [resolvable:$false] %s472_s5 }
  0x3e   : > { %420 = vtanh.f32 %v160_v15  ;;  %p470_p12 = pnand %p469_p10, %p813_p11  ;;  %s474_s11 = scalar_lea.vmem %s473_s5, 4096 }
  0x3f   : > { %422 = vtanh.f32 %v161_v17  ;;  %p475_p5 = scmp.lt.s32.totalorder %s757_s27, %s473_s5  ;;  %p476_p7 = scmp.lt.s32.totalorder %s474_s11, %s468_s3 }
  0x40   : > { %424 = vtanh.f32 %v162_v19  ;;  %p471_p4 = pneg %p470_p12 }
  0x41   : > { %426 = vtanh.f32 %v163_v21  ;;  %p477_p8 = por %p476_p7, %p475_p5 }
  0x42   : > { %428 = vtanh.f32 %v164_v23 }
  0x43   : > { %430 = vtanh.f32 %v165_v25  ;;  %p478_p9 = pnand %p477_p8, %p471_p4 }
  0x44   : > { %432 = vtanh.f32 %v166_v27 }
  0x45   : > { %v409_v32 = vpop.eup %408  ;;  %434 = vtanh.f32 %v167_v29 }
  0x46   : > { %v411_v33 = vpop.eup %410  ;;  %v186_v34 = vadd.f32 1.0, %v409_v32  ;;  %436 = vtanh.f32 %v168_v30 }
  0x47   : > { %v413_v35 = vpop.eup %412  ;;  %v187_v36 = vadd.f32 1.0, %v411_v33  ;;  %438 = vtanh.f32 %v169_v31 }
  0x48   : > { %v415_v37 = vpop.eup %414  ;;  %v202_v38 = vmul.f32 0.5, %v186_v34  ;;  %v188_v39 = vadd.f32 1.0, %v413_v35 }
  0x49   : > { %v417_v40 = vpop.eup %416  ;;  %v203_v41 = vmul.f32 0.5, %v187_v36  ;;  %v189_v42 = vadd.f32 1.0, %v415_v37 }
  0x4a   : > { %v419_v43 = vpop.eup %418  ;;  %v218_v44 = vmul.f32 %v202_v38, %v138_v0  ;;  %v204_v45 = vmul.f32 0.5, %v188_v39  ;;  %v190_v46 = vadd.f32 1.0, %v417_v40 }
  0x4b   : > { %v421_v47 = vpop.eup %420  ;;  %v219_v48 = vmul.f32 %v203_v41, %v660_v1  ;;  %v205_v49 = vmul.f32 0.5, %v189_v42  ;;  %v191_v50 = vadd.f32 1.0, %v419_v43 }
  0x4c   : > { %v423_v51 = vpop.eup %422  ;;  %234 = vst [vmem:[%s722_s17] sm:$0xff] %v218_v44  ;;  %v220_v52 = vmul.f32 %v204_v45, %v663_v2  ;;  %v206_v53 = vmul.f32 0.5, %v190_v46  ;;  %v192_v54 = vadd.f32 1.0, %v421_v47 }
  0x4d   : > { %v425_v55 = vpop.eup %424  ;;  %235 = vst [vmem:[%s722_s17 + $0x8] sm:$0xff] %v219_v48  ;;  %v221_v56 = vmul.f32 %v205_v49, %v668_v6  ;;  %v207_v57 = vmul.f32 0.5, %v191_v50  ;;  %v193_v58 = vadd.f32 1.0, %v423_v51 }
  0x4e   : > { %v427_v59 = vpop.eup %426  ;;  %236 = vst [vmem:[%s722_s17 + $0x10] sm:$0xff] %v220_v52  ;;  %v222_v60 = vmul.f32 %v206_v53, %v671_v7  ;;  %v208_v61 = vmul.f32 0.5, %v192_v54  ;;  %v194_v62 = vadd.f32 1.0, %v425_v55 }
  0x4f   : > { %v429_v63 = vpop.eup %428  ;;  %237 = vst [vmem:[%s722_s17 + $0x18] sm:$0xff] %v221_v56  ;;  %v223_v0 = vmul.f32 %v207_v57, %v674_v8  ;;  %v209_v1 = vmul.f32 0.5, %v193_v58  ;;  %v195_v2 = vadd.f32 1.0, %v427_v59 }
  0x50   : > { %v431_v3 = vpop.eup %430  ;;  %238 = vst [vmem:[%s722_s17 + $0x20] sm:$0xff] %v222_v60  ;;  %v224_v4 = vmul.f32 %v208_v61, %v678_v10  ;;  %v210_v5 = vmul.f32 0.5, %v194_v62  ;;  %v196_v6 = vadd.f32 1.0, %v429_v63 }
  0x51   : > { %v433_v9 = vpop.eup %432  ;;  %239 = vst [vmem:[%s722_s17 + $0x28] sm:$0xff] %v223_v0  ;;  %v225_v7 = vmul.f32 %v209_v1, %v682_v12  ;;  %v211_v11 = vmul.f32 0.5, %v195_v2  ;;  %v197_v13 = vadd.f32 1.0, %v431_v3 }
  0x52   : > { %v435_v15 = vpop.eup %434  ;;  %240 = vst [vmem:[%s722_s17 + $0x30] sm:$0xff] %v224_v4  ;;  %v226_v8 = vmul.f32 %v210_v5, %v686_v14  ;;  %v212_v17 = vmul.f32 0.5, %v196_v6  ;;  %v198_v19 = vadd.f32 1.0, %v433_v9 }
  0x53   : > { %v437_v21 = vpop.eup %436  ;;  %241 = vst [vmem:[%s722_s17 + $0x38] sm:$0xff] %v225_v7  ;;  %v227_v10 = vmul.f32 %v211_v11, %v690_v16  ;;  %v213_v23 = vmul.f32 0.5, %v197_v13  ;;  %v199_v25 = vadd.f32 1.0, %v435_v15 }
  0x54   : > { %v439_v12 = vpop.eup %438  ;;  %242 = vst [vmem:[%s722_s17 + $0x40] sm:$0xff] %v226_v8  ;;  %v228_v27 = vmul.f32 %v212_v17, %v694_v18  ;;  %v214_v29 = vmul.f32 0.5, %v198_v19  ;;  %v200_v30 = vadd.f32 1.0, %v437_v21 }
  0x55   : > { %243 = vst [vmem:[%s722_s17 + $0x48] sm:$0xff] %v227_v10  ;;  %v229_v14 = vmul.f32 %v213_v23, %v698_v20  ;;  %v215_v31 = vmul.f32 0.5, %v199_v25  ;;  %v201_v32 = vadd.f32 1.0, %v439_v12 }
  0x56   : > { %244 = vst [vmem:[%s722_s17 + $0x50] sm:$0xff] %v228_v27  ;;  %v230_v16 = vmul.f32 %v214_v29, %v702_v22  ;;  %v216_v33 = vmul.f32 0.5, %v200_v30 }
  0x57   : > { %245 = vst [vmem:[%s722_s17 + $0x58] sm:$0xff] %v229_v14  ;;  %v231_v18 = vmul.f32 %v215_v31, %v706_v24  ;;  %v217_v34 = vmul.f32 0.5, %v201_v32 }
  0x58   : > { %246 = vst [vmem:[%s722_s17 + $0x60] sm:$0xff] %v230_v16  ;;  %v232_v35 = vmul.f32 %v216_v33, %v710_v26 }
  0x59   : > { %247 = vst [vmem:[%s722_s17 + $0x68] sm:$0xff] %v231_v18  ;;  %v233_v20 = vmul.f32 %v217_v34, %v714_v28 }
  0x5a   : > { %248 = vst [vmem:[%s722_s17 + $0x70] sm:$0xff] %v232_v35 }
  0x5b   : > { %249 = vst [vmem:[%s722_s17 + $0x78] sm:$0xff] %v233_v20 }
  0x5c   : > { %481 = shalt.err (!%p478_p9)
}
  0x5d   : > { %s482_s13 = scalar_lea.hbm %s755_s2, 2048  ;;  %s486_s20 = scalar_lea.hbm %s804_s1, 8192 }
  0x5e   : > { %p483_p13 = scmp.ne.s32.totalorder %s755_s2, %s482_s13  ;;  %p487_p2 = scmp.lt.s32.totalorder %s755_s2, %s804_s1 }
  0x5f   : > { %p488_p3 = scmp.lt.s32.totalorder %s486_s20, %s482_s13 }
  0x60   : > { %p484_p1 = pnand %p483_p13, %p813_p11 }
  0x61   : > { %p489_p6 = por %p488_p3, %p487_p2 }
  0x62   : > { %p485_p0 = pneg %p484_p1 }
  0x64   : > { %p490_p10 = pnand %p489_p6, %p485_p0 }
  0x66   : > { %493 = shalt.err (!%p490_p10)
}
  0x67   : > { %s538_s24 = smov 1024   ;;  %s539_s26 = smov 64  }
  0x68   : > { %360 = dma.vmem_to_hbm [thread:$0]  (%p813_p11), %s757_s27, 2048, %s755_s2, %s251_s10, %s538_s24, %s538_s24, %s539_s26  }
  0x69 PF: > { %p371_p12 = scmp.ge.s32.totalorder %s532_s9, 2  ;;  %s280_s30 = sand.u32 1, %s520_s6  }
  0x6a   : > { %p814_p4 = scmp.ne.s32.totalorder %s810_s19, 0  ;;  %s281_s17 = scalar_lea.sflag [#allocation4], %s280_s30 }
  0x6c   : > { %p367_p5 = pnand %p371_p12, %p814_p4 }
  0x6e   : > { %p368_p7 = pneg %p367_p5 }
  0x70   : > { %515 = dma.done.wait (%p368_p7), %s281_s17, 2048  }
  0x71   : > { %517 = vsyncadd (%p368_p7), %s281_s17, 4294965248  ;;  %p14_p8 = scmp.ge.s32.totalorder %s575_s12, 6   ;;  %s815_s6 = smov %s524_s7 }
  0x72   : > { %s816_s7 = smov %s528_s8  ;;  %s817_s8 = smov %s587_s15 }
  0x73   : > { %s818_s9 = smov %s575_s12  ;;  %16 = sbr.rel (!%p14_p8) target bundleno = 5 (0x5), region = 69 }
  0x78   :  { %286 = vsyncpa [#allocation3], 1 }
  0x79   :  { %288 = vsyncpa [#allocation3 + $0x1], 1 }
  0x7a   :  { %289 = vsyncpa [#allocation4], 1 }
  0x7b   :  { %291 = vsyncpa [#allocation4 + $0x1], 1 }

</bundles_post_ra>
